<compile_context>
chip_gen: v7x
topology: tpu7x:2x2x1
jax: 0.10.0
libtpu: 0.0.40
codegen_flags: <defaults>
</compile_context>

<pallas_src>
import math

import jax
import jax.numpy as jnp
from jax.experimental import pallas as pl
from jax.experimental.pallas import tpu as pltpu

_MIB = 1024 * 1024


def _make_kernel(exp_dtype, compute_dtype):
    def _attention_kernel(q_ref, k_ref, v_ref, out_ref, attn_ref):
        """One grid step: Hb heads x TQ query rows against the full keys/values."""
        q = q_ref[...]                      # (Hb, TQ, D)   native dtype
        k = k_ref[...]                      # (Hb, Sk, D)
        v = v_ref[...]                      # (Hb, Sk, Dv)

        # Fold 1/sqrt(d_k) into q (TQ x D elements) instead of TQ x Sk scores.
        d_k = k.shape[-1]
        scale = jnp.asarray(1.0 / math.sqrt(d_k), q.dtype)
        qs = q * scale

        # Batched contraction over D; MXU consumes it directly — no K transpose.
        scores = jnp.einsum(
            "bqd,bkd->bqk", qs, k, preferred_element_type=jnp.float32
        )                                   # (Hb, TQ, Sk) fp32

        # Numerically stable softmax along keys. Row max / row sum stay fp32;
        # the O(S^2) numerator runs in exp_dtype (bf16 on v6e/v7x bf16 inputs).
        m = jnp.max(scores, axis=-1, keepdims=True)
        e = jnp.exp((scores - m).astype(exp_dtype))                   # EUP
        s = jnp.sum(e, axis=-1, keepdims=True, dtype=jnp.float32)
        inv = pl.reciprocal(s, approx=True)                           # EUP
        inv = inv * (2.0 - s * inv)           # one Newton step on (Hb, TQ, 1)

        # Single low-precision cast of the O(S^2) tile, reused by both
        # consumers (attn writeback and the PV matmul).
        p_lo = (e * inv.astype(e.dtype)).astype(compute_dtype)

        # TODO(synk): nn.Dropout(0.1) is identity in eval mode; training-mode
        # dropout (pltpu.prng_seed + pltpu.stateful_bernoulli) not applied.
        attn_ref[...] = p_lo.astype(attn_ref.dtype)

        out = jnp.einsum(
            "bqk,bkd->bqd", p_lo, v, preferred_element_type=jnp.float32
        )                                   # (Hb, TQ, Dv)
        out_ref[...] = out.astype(out_ref.dtype)

    return _attention_kernel


def _vmem_budget():
    """Generation-aware (tile budget, vmem_limit, physical cap) in bytes."""
    try:
        cap = pltpu.get_tpu_info().vmem_capacity_bytes
    except Exception:
        cap = 64 * _MIB
    if cap >= 96 * _MIB:                 # v5e / v6e: 128 MiB physical VMEM
        return 64 * _MIB, 100 * _MIB, cap
    # v7x: 64 MiB per TensorCore — leave headroom for compiler scratch.
    return 36 * _MIB, 48 * _MIB, cap


def _has_bf16_vpu():
    """bf16 EUP/VPU paths exist on v6e and newer; v5e/v5p/v4 and older lack them."""
    try:
        kind = jax.devices()[0].device_kind.lower()
    except Exception:
        return False
    return not any(tag in kind for tag in ("v2", "v3", "v4", "v5"))


def _choose_tiles(BH, Sq, Sk, D, Dv, in_isz, attn_isz, budget_bytes,
                  kv_buffers, min_steps=8):
    """Pick (Hb heads per step, TQ query rows per step) under a VMEM budget,
    while guaranteeing enough grid steps for pipelining / megacore."""

    def step_bytes(hb, tq):
        q_b = 2 * hb * tq * D * in_isz                  # Q tile, double-buffered
        o_b = 2 * hb * tq * Dv * in_isz                 # out tile
        a_b = 2 * hb * tq * Sk * attn_isz               # attn tile (dominant)
        kv_b = kv_buffers * hb * Sk * (D + Dv) * in_isz  # K/V blocks
        tmp = 3 * hb * tq * Sk * 4                       # fp32 softmax temporaries
        return q_b + o_b + a_b + kv_b + tmp

    # Keep the second-minor dim sublane-dense for packed dtypes.
    row_mult = 8 if in_isz >= 4 else (16 if in_isz == 2 else 32)
    if Sq % row_mult == 0:
        tq_cands = sorted({t for t in range(row_mult, Sq + 1, row_mult)
                           if Sq % t == 0} | {Sq})
    else:
        tq_cands = [Sq]                  # odd Sq: one full-extent block (legal)
    hb_cands = [h for h in range(1, BH + 1) if BH % h == 0]

    # Enough steps for the pipeliner (and >= 2 head blocks for dual-TC parts),
    # capped by what this problem can actually provide.
    target_steps = min(min_steps, BH * (Sq // tq_cands[0]))
    head_target = min(2, BH)

    best, best_key = None, None
    for hb in hb_cands:
        for tq in tq_cands:
            sb = step_bytes(hb, tq)
            fits = sb <= budget_bytes
            steps = (BH // hb) * (Sq // tq)
            key = (
                fits,                          # must fit the VMEM budget
                steps >= target_steps,         # keep the grid multi-step
                (BH // hb) >= head_target,     # let megacore split on heads
                hb * tq if fits else -sb,      # then maximize per-step work
            )
            if best_key is None or key > best_key:
                best, best_key = (hb, tq, sb), key
    return best


def self_attention(q, k, v, mask=None):
    """Pallas implementation of Self_attention.forward (eval mode).

    q: [B, H, Sq, D], k: [B, H, Sk, D], v: [B, H, Sk, Dv]
    Returns [output [B, H, Sq, Dv], attention_weights [B, H, Sq, Sk]].
    NOTE: `mask` is accepted for API parity but ignored — the reference
    PyTorch forward never applies it.
    """
    del mask
    B, H, Sq, D = q.shape
    Sk = k.shape[2]
    Dv = v.shape[3]
    BH = B * H

    qf = q.reshape(BH, Sq, D)
    kf = k.reshape(BH, Sk, D)
    vf = v.reshape(BH, Sk, Dv)

    compute_dtype = q.dtype
    attn_dtype = q.dtype          # bf16 inputs -> bf16 attn writeback (half bytes)
    in_isz = jnp.dtype(q.dtype).itemsize
    attn_isz = jnp.dtype(attn_dtype).itemsize

    # bf16 softmax numerator only where the hardware has bf16 EUP/VPU and the
    # attn output is bf16 anyway; fp32 path otherwise (v5e, fp32 inputs).
    exp_dtype = (jnp.bfloat16
                 if (compute_dtype == jnp.bfloat16 and _has_bf16_vpu())
                 else jnp.float32)

    budget, vmem_limit, vmem_cap = _vmem_budget()
    kernel = _make_kernel(exp_dtype, compute_dtype)

    out_shapes = (
        jax.ShapeDtypeStruct((BH, Sq, Dv), q.dtype),
        jax.ShapeDtypeStruct((BH, Sq, Sk), attn_dtype),
    )

    cost = pl.CostEstimate(
        flops=2 * BH * Sq * Sk * (D + Dv),
        transcendentals=BH * Sq * Sk,
        bytes_accessed=(qf.size + kf.size + vf.size) * in_isz
        + BH * Sq * Dv * in_isz + BH * Sq * Sk * attn_isz,
    )

    def build_and_run(single_buffer_kv):
        kv_bufs = 1 if single_buffer_kv else 2
        hb, tq, step_b = _choose_tiles(
            BH, Sq, Sk, D, Dv, in_isz, attn_isz, budget, kv_bufs)
        grid = (BH // hb, Sq // tq)

        # Shard megacore / dual-TC work along the head axis whenever it has
        # >= 2 blocks, so each core owns a disjoint K/V working set (no
        # duplicated K/V DMA). Otherwise let the q-tile axis be parallel.
        dims = ("parallel", "arbitrary") if grid[0] >= 2 else ("arbitrary", "parallel")

        # K/V blocks are constant along the q-tile axis; a single buffer
        # reclaims VMEM (they only re-fetch at head-block boundaries).
        kv_kwargs = {"pipeline_mode": pl.Buffered(1)} if single_buffer_kv else {}

        grid_spec = pltpu.PrefetchScalarGridSpec(
            num_scalar_prefetch=0,
            grid=grid,
            in_specs=[
                pl.BlockSpec((hb, tq, D), lambda i, j: (i, j, 0)),
                pl.BlockSpec((hb, Sk, D), lambda i, j: (i, 0, 0), **kv_kwargs),
                pl.BlockSpec((hb, Sk, Dv), lambda i, j: (i, 0, 0), **kv_kwargs),
            ],
            out_specs=[
                # Note: for Dv < 128 a lane-dense repack (heads folded into the
                # last dim) would avoid masked stores on the out tile, but the
                # attn store (last dim Sk, already lane-dense) dominates HBM
                # traffic and the repack costs a wrapper-side transpose pass,
                # so it is intentionally not done here.
                pl.BlockSpec((hb, tq, Dv), lambda i, j: (i, j, 0)),
                pl.BlockSpec((hb, tq, Sk), lambda i, j: (i, j, 0)),
            ],
        )

        limit = int(min(vmem_cap - 2 * _MIB,
                        max(vmem_limit, step_b + step_b // 4 + 2 * _MIB)))

        return pl.pallas_call(
            kernel,
            out_shape=out_shapes,
            grid_spec=grid_spec,
            compiler_params=pltpu.CompilerParams(
                dimension_semantics=dims,
                vmem_limit_bytes=limit,
            ),
            cost_estimate=cost,
        )(qf, kf, vf)

    try:
        out_f, attn_f = build_and_run(single_buffer_kv=True)
        out_f, attn_f = jax.block_until_ready((out_f, attn_f))
    except Exception:
        # Fallback: default double-buffered K/V (re-tiled with both buffers
        # accounted for) if single-buffer pipeline_mode is rejected.
        out_f, attn_f = build_and_run(single_buffer_kv=False)

    return [out_f.reshape(B, H, Sq, Dv), attn_f.reshape(B, H, Sq, Sk)]


def _reference(q, k, v):
    d_k = jnp.float32(k.shape[-1])
    logits = jnp.einsum("bhqd,bhkd->bhqk", q, k).astype(jnp.float32) / jnp.sqrt(d_k)
    attn = jax.nn.softmax(logits, axis=-1)
    out = jnp.einsum("bhqk,bhkd->bhqd", attn, v.astype(jnp.float32))
    return out.astype(q.dtype), attn


if __name__ == "__main__":
    B, H, S, D = 2, 4, 8, 32
    key = jax.random.PRNGKey(0)
    kq, kk, kv = jax.random.split(key, 3)
    q = jax.random.normal(kq, (B, H, S, D), dtype=jnp.float32)
    k = jax.random.normal(kk, (B, H, S, D), dtype=jnp.float32)
    v = jax.random.normal(kv, (B, H, S, D), dtype=jnp.float32)

    out, attn = self_attention(q, k, v)
    out = jax.block_until_ready(out)
    attn = jax.block_until_ready(attn)

    ref_out, ref_attn = _reference(q, k, v)
    assert jnp.allclose(out, ref_out, atol=2e-5, rtol=2e-5), "output mismatch"
    assert jnp.allclose(attn, ref_attn.astype(attn.dtype),
                        atol=2e-5, rtol=2e-5), "attn mismatch"

    print("KERNEL_OK")
</pallas_src>

<mosaic_0001>
module attributes {stable_mosaic.version = 11 : i64} {
  func.func @_attention_kernel(%arg0: i32, %arg1: i32, %arg2: memref<1x8x32xf32, #tpu.memory_space<vmem>>, %arg3: memref<1x8x32xf32, #tpu.memory_space<vmem>>, %arg4: memref<1x8x32xf32, #tpu.memory_space<vmem>>, %arg5: memref<1x8x32xf32, #tpu.memory_space<vmem>>, %arg6: memref<1x8x8xf32, #tpu.memory_space<vmem>>) attributes {dimension_semantics = [#tpu.dimension_semantics<parallel>, #tpu.dimension_semantics<arbitrary>], iteration_bounds = array<i64: 8, 1>, scalar_prefetch = 0 : i64, scratch_operands = 0 : i64, tpu.core_type = #tpu.core_type<tc>, window_params = [{transform_indices = @transform_0, window_bounds = array<i64: 1, 8, 32>}, {pipeline_mode = #tpu.pipeline_mode<synchronous>, transform_indices = @transform_1, window_bounds = array<i64: 1, 8, 32>}, {pipeline_mode = #tpu.pipeline_mode<synchronous>, transform_indices = @transform_2, window_bounds = array<i64: 1, 8, 32>}, {transform_indices = @transform_3, window_bounds = array<i64: 1, 8, 32>}, {transform_indices = @transform_4, window_bounds = array<i64: 1, 8, 8>}]} {
    %c0 = arith.constant 0 : index
    %c0_0 = arith.constant 0 : index
    %c0_1 = arith.constant 0 : index
    %0 = vector.load %arg2[%c0, %c0_0, %c0_1] : memref<1x8x32xf32, #tpu.memory_space<vmem>>, vector<1x8x32xf32>
    %c0_2 = arith.constant 0 : index
    %c0_3 = arith.constant 0 : index
    %c0_4 = arith.constant 0 : index
    %1 = vector.load %arg3[%c0_2, %c0_3, %c0_4] : memref<1x8x32xf32, #tpu.memory_space<vmem>>, vector<1x8x32xf32>
    %c0_5 = arith.constant 0 : index
    %c0_6 = arith.constant 0 : index
    %c0_7 = arith.constant 0 : index
    %2 = vector.load %arg4[%c0_5, %c0_6, %c0_7] : memref<1x8x32xf32, #tpu.memory_space<vmem>>, vector<1x8x32xf32>
    %cst = arith.constant 0.176776692 : f32
    %3 = vector.broadcast %cst : f32 to vector<1x8x32xf32>
    %4 = arith.mulf %0, %3 : vector<1x8x32xf32>
    "tpu.trace_start"() <{level = 10 : i32, message = "bqd,bkd->bqk"}> : () -> ()
    %cst_8 = arith.constant dense<0.000000e+00> : vector<1x8x8xf32>
    %5 = tpu.matmul %4, %1, %cst_8 {dimension_numbers = #tpu.dot_dimension_numbers<[2], [2], [1], [1], [0, 0, 0, 1, 1, 1], [0], [0]>} : vector<1x8x32xf32>, vector<1x8x32xf32>, vector<1x8x8xf32> -> vector<1x8x8xf32>
    "tpu.trace_stop"() : () -> ()
    %cst_9 = arith.constant dense<0xFF800000> : vector<1x8xf32>
    %6 = vector.multi_reduction <maximumf>, %5, %cst_9 [2] : vector<1x8x8xf32> to vector<1x8xf32>
    %7 = vector.shape_cast %6 : vector<1x8xf32> to vector<1x8x1xf32>
    %8 = vector.broadcast %7 : vector<1x8x1xf32> to vector<1x8x8xf32>
    %9 = arith.subf %5, %8 : vector<1x8x8xf32>
    %10 = math.exp %9 : vector<1x8x8xf32>
    %cst_10 = arith.constant dense<0.000000e+00> : vector<1x8xf32>
    %11 = vector.multi_reduction <add>, %10, %cst_10 [2] : vector<1x8x8xf32> to vector<1x8xf32>
    %12 = vector.shape_cast %11 : vector<1x8xf32> to vector<1x8x1xf32>
    %13 = tpu.reciprocal %12 {approx = true} : vector<1x8x1xf32> -> vector<1x8x1xf32>
    %14 = arith.mulf %12, %13 : vector<1x8x1xf32>
    %cst_11 = arith.constant 2.000000e+00 : f32
    %15 = vector.broadcast %cst_11 : f32 to vector<1x8x1xf32>
    %16 = arith.subf %15, %14 : vector<1x8x1xf32>
    %17 = arith.mulf %13, %16 : vector<1x8x1xf32>
    %18 = vector.broadcast %17 : vector<1x8x1xf32> to vector<1x8x8xf32>
    %19 = arith.mulf %10, %18 : vector<1x8x8xf32>
    %c0_12 = arith.constant 0 : index
    %c0_13 = arith.constant 0 : index
    %c0_14 = arith.constant 0 : index
    %20 = vector.load %arg6[%c0_12, %c0_13, %c0_14] : memref<1x8x8xf32, #tpu.memory_space<vmem>>, vector<1x8x8xf32>
    tpu.vector_store %arg6[%c0_12, %c0_13, %c0_14], %19 {strides = array<i32>} : memref<1x8x8xf32, #tpu.memory_space<vmem>>, vector<1x8x8xf32>,
    "tpu.trace_start"() <{level = 10 : i32, message = "bqk,bkd->bqd"}> : () -> ()
    %cst_15 = arith.constant dense<0.000000e+00> : vector<1x8x32xf32>
    %21 = tpu.matmul %19, %2, %cst_15 {dimension_numbers = #tpu.dot_dimension_numbers<[2], [1], [1], [2], [0, 0, 0, 1, 1, 2], [0], [0]>} : vector<1x8x8xf32>, vector<1x8x32xf32>, vector<1x8x32xf32> -> vector<1x8x32xf32>
    "tpu.trace_stop"() : () -> ()
    %c0_16 = arith.constant 0 : index
    %c0_17 = arith.constant 0 : index
    %c0_18 = arith.constant 0 : index
    %22 = vector.load %arg5[%c0_16, %c0_17, %c0_18] : memref<1x8x32xf32, #tpu.memory_space<vmem>>, vector<1x8x32xf32>
    tpu.vector_store %arg5[%c0_16, %c0_17, %c0_18], %21 {strides = array<i32>} : memref<1x8x32xf32, #tpu.memory_space<vmem>>, vector<1x8x32xf32>,
    return
  }
  func.func @transform_0(%arg0: i32, %arg1: i32) -> (i32, i32, i32) {
    %c0_i32 = arith.constant 0 : i32
    %c0_i32_0 = arith.constant 0 : i32
    return %arg0, %arg1, %c0_i32 : i32, i32, i32
  }
  func.func @transform_1(%arg0: i32, %arg1: i32) -> (i32, i32, i32) {
    %c0_i32 = arith.constant 0 : i32
    %c0_i32_0 = arith.constant 0 : i32
    %c0_i32_1 = arith.constant 0 : i32
    return %arg0, %c0_i32, %c0_i32_0 : i32, i32, i32
  }
  func.func @transform_2(%arg0: i32, %arg1: i32) -> (i32, i32, i32) {
    %c0_i32 = arith.constant 0 : i32
    %c0_i32_0 = arith.constant 0 : i32
    %c0_i32_1 = arith.constant 0 : i32
    return %arg0, %c0_i32, %c0_i32_0 : i32, i32, i32
  }
  func.func @transform_3(%arg0: i32, %arg1: i32) -> (i32, i32, i32) {
    %c0_i32 = arith.constant 0 : i32
    %c0_i32_0 = arith.constant 0 : i32
    return %arg0, %arg1, %c0_i32 : i32, i32, i32
  }
  func.func @transform_4(%arg0: i32, %arg1: i32) -> (i32, i32, i32) {
    %c0_i32 = arith.constant 0 : i32
    %c0_i32_0 = arith.constant 0 : i32
    return %arg0, %arg1, %c0_i32 : i32, i32, i32
  }
}

module attributes {stable_mosaic.version = 11 : i64} {
  func.func @_attention_kernel(%arg0: i32, %arg1: i32, %arg2: memref<1x8x32xf32, #tpu.memory_space<vmem>>, %arg3: memref<1x8x32xf32, #tpu.memory_space<vmem>>, %arg4: memref<1x8x32xf32, #tpu.memory_space<vmem>>, %arg5: memref<1x8x32xf32, #tpu.memory_space<vmem>>, %arg6: memref<1x8x8xf32, #tpu.memory_space<vmem>>) attributes {dimension_semantics = [#tpu.dimension_semantics<parallel>, #tpu.dimension_semantics<arbitrary>], iteration_bounds = array<i64: 8, 1>, scalar_prefetch = 0 : i64, scratch_operands = 0 : i64, tpu.core_type = #tpu.core_type<tc>, window_params = [{transform_indices = @transform_0, window_bounds = array<i64: 1, 8, 32>}, {transform_indices = @transform_1, window_bounds = array<i64: 1, 8, 32>}, {transform_indices = @transform_2, window_bounds = array<i64: 1, 8, 32>}, {transform_indices = @transform_3, window_bounds = array<i64: 1, 8, 32>}, {transform_indices = @transform_4, window_bounds = array<i64: 1, 8, 8>}]} {
    %c0 = arith.constant 0 : index
    %c0_0 = arith.constant 0 : index
    %c0_1 = arith.constant 0 : index
    %0 = vector.load %arg2[%c0, %c0_0, %c0_1] : memref<1x8x32xf32, #tpu.memory_space<vmem>>, vector<1x8x32xf32>
    %c0_2 = arith.constant 0 : index
    %c0_3 = arith.constant 0 : index
    %c0_4 = arith.constant 0 : index
    %1 = vector.load %arg3[%c0_2, %c0_3, %c0_4] : memref<1x8x32xf32, #tpu.memory_space<vmem>>, vector<1x8x32xf32>
    %c0_5 = arith.constant 0 : index
    %c0_6 = arith.constant 0 : index
    %c0_7 = arith.constant 0 : index
    %2 = vector.load %arg4[%c0_5, %c0_6, %c0_7] : memref<1x8x32xf32, #tpu.memory_space<vmem>>, vector<1x8x32xf32>
    %cst = arith.constant 0.176776692 : f32
    %3 = vector.broadcast %cst : f32 to vector<1x8x32xf32>
    %4 = arith.mulf %0, %3 : vector<1x8x32xf32>
    "tpu.trace_start"() <{level = 10 : i32, message = "bqd,bkd->bqk"}> : () -> ()
    %cst_8 = arith.constant dense<0.000000e+00> : vector<1x8x8xf32>
    %5 = tpu.matmul %4, %1, %cst_8 {dimension_numbers = #tpu.dot_dimension_numbers<[2], [2], [1], [1], [0, 0, 0, 1, 1, 1], [0], [0]>} : vector<1x8x32xf32>, vector<1x8x32xf32>, vector<1x8x8xf32> -> vector<1x8x8xf32>
    "tpu.trace_stop"() : () -> ()
    %cst_9 = arith.constant dense<0xFF800000> : vector<1x8xf32>
    %6 = vector.multi_reduction <maximumf>, %5, %cst_9 [2] : vector<1x8x8xf32> to vector<1x8xf32>
    %7 = vector.shape_cast %6 : vector<1x8xf32> to vector<1x8x1xf32>
    %8 = vector.broadcast %7 : vector<1x8x1xf32> to vector<1x8x8xf32>
    %9 = arith.subf %5, %8 : vector<1x8x8xf32>
    %10 = math.exp %9 : vector<1x8x8xf32>
    %cst_10 = arith.constant dense<0.000000e+00> : vector<1x8xf32>
    %11 = vector.multi_reduction <add>, %10, %cst_10 [2] : vector<1x8x8xf32> to vector<1x8xf32>
    %12 = vector.shape_cast %11 : vector<1x8xf32> to vector<1x8x1xf32>
    %13 = tpu.reciprocal %12 {approx = true} : vector<1x8x1xf32> -> vector<1x8x1xf32>
    %14 = arith.mulf %12, %13 : vector<1x8x1xf32>
    %cst_11 = arith.constant 2.000000e+00 : f32
    %15 = vector.broadcast %cst_11 : f32 to vector<1x8x1xf32>
    %16 = arith.subf %15, %14 : vector<1x8x1xf32>
    %17 = arith.mulf %13, %16 : vector<1x8x1xf32>
    %18 = vector.broadcast %17 : vector<1x8x1xf32> to vector<1x8x8xf32>
    %19 = arith.mulf %10, %18 : vector<1x8x8xf32>
    %c0_12 = arith.constant 0 : index
    %c0_13 = arith.constant 0 : index
    %c0_14 = arith.constant 0 : index
    %20 = vector.load %arg6[%c0_12, %c0_13, %c0_14] : memref<1x8x8xf32, #tpu.memory_space<vmem>>, vector<1x8x8xf32>
    tpu.vector_store %arg6[%c0_12, %c0_13, %c0_14], %19 {strides = array<i32>} : memref<1x8x8xf32, #tpu.memory_space<vmem>>, vector<1x8x8xf32>,
    "tpu.trace_start"() <{level = 10 : i32, message = "bqk,bkd->bqd"}> : () -> ()
    %cst_15 = arith.constant dense<0.000000e+00> : vector<1x8x32xf32>
    %21 = tpu.matmul %19, %2, %cst_15 {dimension_numbers = #tpu.dot_dimension_numbers<[2], [1], [1], [2], [0, 0, 0, 1, 1, 2], [0], [0]>} : vector<1x8x8xf32>, vector<1x8x32xf32>, vector<1x8x32xf32> -> vector<1x8x32xf32>
    "tpu.trace_stop"() : () -> ()
    %c0_16 = arith.constant 0 : index
    %c0_17 = arith.constant 0 : index
    %c0_18 = arith.constant 0 : index
    %22 = vector.load %arg5[%c0_16, %c0_17, %c0_18] : memref<1x8x32xf32, #tpu.memory_space<vmem>>, vector<1x8x32xf32>
    tpu.vector_store %arg5[%c0_16, %c0_17, %c0_18], %21 {strides = array<i32>} : memref<1x8x32xf32, #tpu.memory_space<vmem>>, vector<1x8x32xf32>,
    return
  }
  func.func @transform_0(%arg0: i32, %arg1: i32) -> (i32, i32, i32) {
    %c0_i32 = arith.constant 0 : i32
    %c0_i32_0 = arith.constant 0 : i32
    return %arg0, %arg1, %c0_i32 : i32, i32, i32
  }
  func.func @transform_1(%arg0: i32, %arg1: i32) -> (i32, i32, i32) {
    %c0_i32 = arith.constant 0 : i32
    %c0_i32_0 = arith.constant 0 : i32
    %c0_i32_1 = arith.constant 0 : i32
    return %arg0, %c0_i32, %c0_i32_0 : i32, i32, i32
  }
  func.func @transform_2(%arg0: i32, %arg1: i32) -> (i32, i32, i32) {
    %c0_i32 = arith.constant 0 : i32
    %c0_i32_0 = arith.constant 0 : i32
    %c0_i32_1 = arith.constant 0 : i32
    return %arg0, %c0_i32, %c0_i32_0 : i32, i32, i32
  }
  func.func @transform_3(%arg0: i32, %arg1: i32) -> (i32, i32, i32) {
    %c0_i32 = arith.constant 0 : i32
    %c0_i32_0 = arith.constant 0 : i32
    return %arg0, %arg1, %c0_i32 : i32, i32, i32
  }
  func.func @transform_4(%arg0: i32, %arg1: i32) -> (i32, i32, i32) {
    %c0_i32 = arith.constant 0 : i32
    %c0_i32_0 = arith.constant 0 : i32
    return %arg0, %arg1, %c0_i32 : i32, i32, i32
  }
}

</mosaic_0001>

<bundles_post_ra>
// kernel: tpu_custom_call.1
= control target key start
LH: loop header
LB: loop body
LE: loop exit
PB: predicated region body
PF: predicated region fallthrough
CT: control target
= control target key end

     0   :  { %10 = vsyncpa [#allocation3], 0  ;;  %s1267_s0 = inlined_call_operand.hbm [shape: f32[8,8,32], index: 0, kind: input, shape index: {}]   ;;  %s1268_s1 = inlined_call_operand.hbm [shape: f32[8,8,32], index: 1, kind: input, shape index: {}]   ;;  %s1269_s2 = inlined_call_operand.hbm [shape: f32[8,8,32], index: 2, kind: input, shape index: {}]   ;;  %s1270_s3 = inlined_call_operand.hbm [shape: f32[8,8,32], index: 3, kind: output, shape index: {0}]   ;;  %s1271_s4 = inlined_call_operand.hbm [shape: f32[8,8,8], index: 4, kind: output, shape index: {1}]  }
   0x1   :  { %12 = vsyncpa [#allocation3 + $0x1], 0 }
   0x2   :  { %13 = vsyncpa [#allocation6], 0 }
   0x3   :  { %14 = vsyncpa [#allocation4], 0 }
   0x4   :  { %16 = vsyncpa [#allocation4 + $0x1], 0 }
   0x5   :  { %17 = vsyncpa [#allocation10], 0 }
   0x6   :  { %19 = vsyncpa [#allocation10 + $0x1], 0  ;;  %s986_s15 = smov 0   ;;  %s988_s16 = smov 0  }
   0x7   :  { %s990_s17 = smov 0   ;;  %s992_s18 = smov 0  }
   0x8   :  { %s994_s19 = smov 0   ;;  %s996_s20 = smov 0  }
   0x9 LB: > { %s623_s21 = sadd.s32 4294967295, %s952_s20   ;;  %s624_s22 = sadd.s32 4294967294, %s952_s20   ;;  %s952_s20 = sphi %s996_s20, %s25_s20   ;;  %s948_s19 = sphi %s994_s19, %s1290_s19   ;;  %s944_s18 = sphi %s992_s18, %s1289_s18   ;;  %s940_s17 = sphi %s990_s17, %s1288_s17   ;;  %s936_s16 = sphi %s988_s16, %s1287_s16   ;;  %s932_s15 = sphi %s986_s15, %s1286_s15  }
   0xa   : > { %p59_p0 = scmp.ne.s32.totalorder %s936_s16, %s932_s15  ;;  %p60_p1 = scmp.eq.s32.totalorder %s623_s21, 0 }
   0xb   : > { %p1018_p2 = scmp.eq.s32.totalorder %s623_s21, 7  ;;  %p143_p3 = scmp.eq.s32.totalorder %s624_s22, 7 }
   0xc   : > { %p1022_p4 = por %p60_p1, %p59_p0  ;;  %p625_p5 = scmp.ge.s32.totalorder %s952_s20, 1 }
   0xd   : > { %s1275_s23 = scalar_select %p1018_p2, 1, 0 }
   0xe   : > { %s1276_s24 = scalar_select %p1022_p4, 1, 0 }
   0xf   : > { %p1027_p6 = por %p143_p3, %p59_p0  ;;  %p178_p7 = scmp.lt.s32.totalorder %s952_s20, 9 }
  0x10   : > { %s1032_s26 = sshll.u32 %s944_s18, 7  ;;  %s954_s5 = smov [#allocation5]  }
  0x11   : > { %s1277_s25 = scalar_select %p1027_p6, 1, 0 }
  0x12   : > { %p1034_p8 = pnand %p625_p5, %p178_p7  ;;  %s1042_s30 = scalar_lea.hbm %s1268_s1, %s1032_s26 }
  0x13   : > { %s193_s6 = sshll.u32 %s954_s5, 4  ;;  %s1050_s9 = scalar_lea.hbm %s1269_s2, %s1032_s26  ;;  %s194_s6 = int_to_ptr.vmem [resolvable:$true] %s193_s6 }
  0x14   : > { %s1278_s27 = scalar_select %p1034_p8, 1, 0 }
  0x15   : > { %p668_p9 = pneg %p1034_p8  ;;  %s955_s11 = smov [#allocation7]  }
  0x16   : > { %s206_s12 = sshll.u32 %s955_s11, 4  ;;  %s744_s13 = scalar_lea.hbm %s1042_s30, 128  ;;  %s1058_s12 = int_to_ptr.vmem [resolvable:$true] %s206_s12 }
  0x17   : > { %p1054_p10 = pnand %p668_p9, %p1022_p4  ;;  %p745_p11 = scmp.ne.s32.totalorder %s1042_s30, %s744_s13 }
  0x18   : > { %s749_s21 = scalar_lea.hbm %s1268_s1, 1024  ;;  %p750_p1 = scmp.lt.u32.totalorder %s1042_s30, %s1268_s1 }
  0x19   : > { %p746_p12 = pneg %p1054_p10  ;;  %p751_p3 = scmp.lt.u32.totalorder %s749_s21, %s744_s13 }
  0x1a   : > { %p753_p7 = scmp.lt.u32.totalorder %s744_s13, %s1042_s30 }
  0x1b   : > { %p747_p13 = pnand %p746_p12, %p745_p11  ;;  %p752_p5 = por %p751_p3, %p750_p1 }
  0x1d   : > { %p748_p0 = pneg %p747_p13  ;;  %p754_p9 = por %p753_p7, %p752_p5 }
  0x1f   : > { %p755_p6 = pnand %p754_p9, %p748_p0 }
  0x21   : > { %758 = shalt.err (!%p755_p6)
}
  0x22   : > { %s759_s29 = scalar_lea.vmem %s194_s6, 128  ;;  %p767_p8 = scmp.lt.s32.totalorder %s194_s6, %s194_s6 }
  0x23   : > { %p760_p4 = scmp.ne.s32.totalorder %s194_s6, %s759_s29  ;;  %p768_p2 = scmp.lt.s32.totalorder %s759_s29, %s759_s29 }
  0x25   : > { %p762_p11 = pnand %p760_p4, %p746_p12  ;;  %p769_p1 = por %p768_p2, %p767_p8 }
  0x27   : > { %p763_p13 = pneg %p762_p11 }
  0x29   : > { %p770_p3 = pnand %p769_p1, %p763_p13 }
  0x2b   : > { %773 = shalt.err (!%p770_p3)
}
  0x2c   : > { %671 = dma.hbm_to_vmem [thread:$0]  (!%p1054_p10), %s1042_s30, 128, %s194_s6, [#allocation6]  }
  0x2d   : > { %s774_s5 = scalar_lea.hbm %s1050_s9, 128  ;;  %s779_s11 = scalar_lea.hbm %s1269_s2, 1024 }
  0x2e   : > { %p775_p6 = scmp.ne.s32.totalorder %s1050_s9, %s774_s5  ;;  %p780_p2 = scmp.lt.u32.totalorder %s1050_s9, %s1269_s2 }
  0x2f   : > { %p781_p8 = scmp.lt.u32.totalorder %s779_s11, %s774_s5  ;;  %p783_p7 = scmp.lt.u32.totalorder %s774_s5, %s1050_s9 }
  0x30   : > { %p777_p4 = pnand %p775_p6, %p746_p12 }
  0x31   : > { %p782_p5 = por %p781_p8, %p780_p2 }
  0x32   : > { %p778_p0 = pneg %p777_p4 }
  0x33   : > { %p784_p9 = por %p783_p7, %p782_p5 }
  0x35   : > { %p785_p11 = pnand %p784_p9, %p778_p0 }
  0x37   : > { %788 = shalt.err (!%p785_p11)
}
  0x38   : > { %s789_s30 = scalar_lea.vmem %s1058_s12, 128  ;;  %p797_p6 = scmp.lt.s32.totalorder %s1058_s12, %s1058_s12 }
  0x39   : > { %p790_p13 = scmp.ne.s32.totalorder %s1058_s12, %s789_s30  ;;  %p798_p4 = scmp.lt.s32.totalorder %s789_s30, %s789_s30 }
  0x3b   : > { %p792_p1 = pnand %p790_p13, %p746_p12  ;;  %p799_p2 = por %p798_p4, %p797_p6 }
  0x3d   : > { %p793_p3 = pneg %p792_p1 }
  0x3f   : > { %p800_p8 = pnand %p799_p2, %p793_p3 }
  0x41   : > { %803 = shalt.err (!%p800_p8)
}
  0x42   : > { %674 = dma.hbm_to_vmem [thread:$0]  (!%p1054_p10), %s1050_s9, 128, %s1058_s12, [#allocation6]  }
  0x43   : > { %s37_s6 = sadd.s32 1, %s948_s19  ;;  %s46_s18 = sadd.s32 1, %s940_s17 }
  0x44   : > { %p39_p12 = scmp.ge.s32.totalorder %s37_s6, 8  ;;  %p53_p0 = scmp.ne.s32.totalorder %s940_s17, %s936_s16 }
  0x45   : > { %p54_p5 = scmp.eq.s32.totalorder %s952_s20, 0  ;;  %p686_p7 = scmp.lt.s32.totalorder %s952_s20, 8 }
  0x46   : > { %s1292_s6 = smov (%p39_p12, %s37_s6), 0  ;;  %p1280_p11 = scmp.ne.s32.totalorder %s1275_s23, 0 }
  0x47   : > { %p55_p9 = por %p54_p5, %p53_p0  ;;  %s41_s21 = ssub.s32 %s948_s19, %s1292_s6 }
  0x48   : > { %p1115_p13 = por %p1280_p11, %p53_p0  ;;  %s217_s22 = sand.u32 1, %s940_s17  }
  0x49   : > { %p44_p1 = scmp.eq.s32.totalorder %s41_s21, 0  ;;  %s629_s9 = sshll.u32 %s217_s22, 3 }
  0x4a   : > { %s630_s12 = sshll.u32 %s948_s19, 7  ;;  %s221_s23 = scalar_lea.vmem [#allocation2], %s629_s9 }
  0x4b   : > { %s1124_s28 = scalar_select %p44_p1, %s940_s17, %s46_s18  }
  0x4c   : > { %s1129_s7 = scalar_lea.hbm %s1267_s0, %s630_s12  ;;  %s229_s8 = sshll.u32 %s221_s23, 4  ;;  %s1137_s8 = int_to_ptr.vmem [resolvable:$true] %s229_s8 }
  0x4d   : > { %p1133_p10 = pnand %p686_p7, %p55_p9  ;;  %s218_s13 = scalar_lea.sflag [#allocation3], %s217_s22 }
  0x4e   : > { %s804_s14 = scalar_lea.hbm %s1129_s7, 128  ;;  %s809_s21 = scalar_lea.hbm %s1267_s0, 1024 }
  0x4f   : > { %p805_p3 = scmp.ne.s32.totalorder %s1129_s7, %s804_s14  ;;  %p806_p6 = pneg %p1133_p10 }
  0x50   : > { %p810_p8 = scmp.lt.u32.totalorder %s1129_s7, %s1267_s0  ;;  %p811_p12 = scmp.lt.u32.totalorder %s809_s21, %s804_s14 }
  0x51   : > { %p807_p4 = pnand %p806_p6, %p805_p3  ;;  %p813_p5 = scmp.lt.u32.totalorder %s804_s14, %s1129_s7 }
  0x52   : > { %p812_p0 = por %p811_p12, %p810_p8 }
  0x53   : > { %p808_p2 = pneg %p807_p4 }
  0x54   : > { %p814_p7 = por %p813_p5, %p812_p0 }
  0x56   : > { %p815_p9 = pnand %p814_p7, %p808_p2 }
  0x58   : > { %818 = shalt.err (!%p815_p9)
}
  0x59   : > { %s819_s22 = scalar_lea.vmem %s1137_s8, 128  ;;  %s956_s29 = smov [#allocation2]  }
  0x5a   : > { %p820_p11 = scmp.ne.s32.totalorder %s1137_s8, %s819_s22  ;;  %s824_s5 = sshll.u32 %s956_s29, 4  ;;  %s825_s5 = int_to_ptr.vmem [resolvable:$false] %s824_s5 }
  0x5b   : > { %s826_s23 = scalar_lea.vmem %s825_s5, 256  ;;  %p827_p4 = scmp.lt.s32.totalorder %s1137_s8, %s825_s5 }
  0x5c   : > { %p822_p1 = pnand %p820_p11, %p806_p6  ;;  %p828_p8 = scmp.lt.s32.totalorder %s826_s23, %s819_s22 }
  0x5e   : > { %p823_p3 = pneg %p822_p1  ;;  %p829_p12 = por %p828_p8, %p827_p4 }
  0x60   : > { %p830_p0 = pnand %p829_p12, %p823_p3 }
  0x62   : > { %833 = shalt.err (!%p830_p0)
}
  0x63   : > { %678 = dma.hbm_to_vmem [thread:$0]  (!%p1133_p10), %s1129_s7, 128, %s1137_s8, %s218_s13  }
  0x64   : > { %p1283_p2 = scmp.ne.s32.totalorder %s1278_s27, 0 }
  0x65   : > { %s1167_s14 = sand.u32 (!%p1283_p2), 1, %s936_s16   ;;  %p1284_p6 = scmp.ne.s32.totalorder (!%p1283_p2), %s1276_s24, 0 }
  0x66   : > { %238 = sbr.rel (%p1283_p2) target bundleno = 876 (0x36c), region = 32  ;;  %s1170_s30 = sshll.u32 (!%p1283_p2), %s1167_s14, 3 }
  0x67   : > { %s241_s18 = scalar_lea.sflag (!%p1283_p2), [#allocation3], %s1167_s14  ;;  %s244_s21 = scalar_lea.vmem (!%p1283_p2), [#allocation2], %s1170_s30 }
  0x6d   : > { %915 = dma.done.wait (%p1284_p6), %s241_s18, 128  }
  0x6e   : > { %917 = vsyncadd (%p1284_p6), %s241_s18, 4294967168 }
  0x6f   : > { %919 = dma.done.wait (%p1284_p6), [#allocation6], 256  }
  0x70   : > { %921 = vsyncadd (%p1284_p6), [#allocation6], 4294967040  ;;  %v957_v0 = vmov 0.0   ;;  %vm958_vm0 = vmmov 0   ;;  %vm286_vm1 = vcmask 261120   ;;  %v283_v1 = vld [vmem:[#allocation5] sm:$0xff]  ;;  %s1193_s11 = scalar_lea.hbm %s1271_s4, %s1032_s26 }
  0x71   : > { %648 = vmatprep.subr.mxu0 %v957_v0  ;;  %650 = vmatprep.mubr.msk.f32.mxu0 %vm958_vm0, %v957_v0  ;;  %v282_v2 = vld [vmem:[%s244_s21] sm:$0xff]  ;;  %vm363_vm2 = vcmask 64512   ;;  %v284_v12 = vld [vmem:[#allocation7] sm:$0xff]  ;;  %s281_s24 = scalar_lea.vmem [#allocation9], %s1170_s30  ;;  %s459_s13 = scalar_lea.sflag [#allocation10], %s1167_s14 }
  0x72   : > { %653 = vmatprep.subr.mxu1 %v957_v0  ;;  %655 = vmatprep.mubr.msk.f32.mxu1 %vm958_vm0, %v957_v0  ;;  %v285_v3 = vmul.f32 0.17677669, %v282_v2  ;;  %s487_s27 = sshll.u32 %s281_s24, 4  ;;  %s959_s12 = smov [#allocation9]   ;;  %s488_s27 = int_to_ptr.vmem [resolvable:$true] %s487_s27 }
  0x73   : > { %649 = vmatpush3.xpose.msk.msra.mxu0 %vm286_vm1, %v283_v1  ;;  %654 = vmatpush3.msra.mxu1 %v284_v12  ;;  %s834_s9 = scalar_lea.vmem %s488_s27, 128  ;;  %s838_s22 = sshll.u32 %s959_s12, 4  ;;  %s839_s22 = int_to_ptr.vmem [resolvable:$false] %s838_s22 }
  0x74   : > { %p835_p10 = scmp.ne.s32.totalorder %s488_s27, %s834_s9  ;;  %s840_s29 = scalar_lea.vmem %s839_s22, 256 }
  0x75   : > { %p841_p9 = scmp.lt.s32.totalorder %s488_s27, %s839_s22  ;;  %p842_p11 = scmp.lt.s32.totalorder %s840_s29, %s834_s9 }
  0x76   : > { %651 = vmatmul.mubr.msk.f32.vlgmr.msra.gmra.mrb[0].mxu0 %vm286_vm1, %v285_v3  ;;  %p836_p5 = pnand %p835_p10, %p1115_p13 }
  0x77   : > { %p843_p1 = por %p842_p11, %p841_p9 }
  0x78   : > { %p837_p7 = pneg %p836_p5 }
  0x7a   : > { %p844_p3 = pnand %p843_p1, %p837_p7 }
 0x149   : > { %v359_v4 = vpop.f32.mrb[0].mxu0 }
 0x14a   : > { %v652_v5 = vpop.f32.mrb[1].mxu0  ;;  %v364_v6 = vsel %vm363_vm2, %v359_v4, -inf }
 0x14b   : > { %365 = vmax.xlane.f32.xlu0 %v364_v6 }
 0x1d8   : > { %v366_v7 = vpop.xlane.xlu0 %365 }
 0x1d9   : > { %v367_v8 = vsub.f32 %v359_v4, %v366_v7 }
 0x1db   : > { %v368_v9 = vmul.f32 1.442695, %v367_v8 }
 0x1dd   : > { %740 = vpow2.f32 %v368_v9 }
 0x1e7   : > { %v741_v10 = vpop.eup %740 }
 0x1e8   : > { %v370_v11 = vsel %vm363_vm2, %v741_v10, 0.0 }
 0x1e9   : > { %371 = vadd.xlane.f32.xlu0 %v370_v11 }
 0x276   : > { %v372_v13 = vpop.xlane.xlu0 %371 }
 0x277   : > { %742 = vrcp.f32 %v372_v13 }
 0x281   : > { %v743_v14 = vpop.eup %742 }
 0x282   : > { %v374_v15 = vmul.f32 %v743_v14, %v372_v13 }
 0x284   : > { %v375_v16 = vsub.f32 2.0, %v374_v15 }
 0x286   : > { %v376_v17 = vmul.f32 %v743_v14, %v375_v16 }
 0x288   : > { %v377_v18 = vmul.f32 %v741_v10, %v376_v17 }
 0x28a   : > { %656 = vmatmul.mubr.msk.f32.vlgmr.msra.gmra.mrb[0].mxu1 %vm363_vm2, %v377_v18  ;;  %378 = vst.msk [vmem:[%s281_s24] sm:$0xff] %vm363_vm2, %v377_v18 }
 0x28b   : > { %847 = shalt.err (!%p844_p3)
}
 0x28c   : > { %s848_s5 = scalar_lea.hbm %s1193_s11, 128  ;;  %s852_s21 = scalar_lea.hbm %s1271_s4, 1024 }
 0x28d   : > { %p849_p4 = scmp.ne.s32.totalorder %s1193_s11, %s848_s5  ;;  %p853_p0 = scmp.lt.u32.totalorder %s1193_s11, %s1271_s4 }
 0x28e   : > { %p854_p2 = scmp.lt.u32.totalorder %s852_s21, %s848_s5  ;;  %p856_p10 = scmp.lt.u32.totalorder %s848_s5, %s1193_s11 }
 0x28f   : > { %p850_p8 = pnand %p849_p4, %p1115_p13 }
 0x290   : > { %p855_p6 = por %p854_p2, %p853_p0 }
 0x291   : > { %p851_p12 = pneg %p850_p8 }
 0x292   : > { %p857_p5 = por %p856_p10, %p855_p6 }
 0x294   : > { %p858_p7 = pnand %p857_p5, %p851_p12 }
 0x296   : > { %861 = shalt.err (!%p858_p7)
}
 0x297   : > { %665 = dma.vmem_to_hbm [thread:$0]  (%p1115_p13), %s488_s27, 128, %s1193_s11, %s459_s13  }
 0x298   : > { %s274_s8 = scalar_lea.vmem [#allocation8], %s1170_s30  ;;  %s1218_s29 = scalar_lea.hbm %s1270_s3, %s1032_s26 }
 0x299   : > { %s473_s9 = sshll.u32 %s274_s8, 4  ;;  %s454_s5 = scalar_lea.sflag [#allocation4], %s1167_s14  ;;  %s1220_s9 = int_to_ptr.vmem [resolvable:$true] %s473_s9 }
 0x29a   : > { %s862_s23 = scalar_lea.vmem %s1220_s9, 128  ;;  %s960_s30 = smov [#allocation8]  }
 0x29b   : > { %p863_p9 = scmp.ne.s32.totalorder %s1220_s9, %s862_s23  ;;  %s866_s27 = sshll.u32 %s960_s30, 4  ;;  %s867_s27 = int_to_ptr.vmem [resolvable:$false] %s866_s27 }
 0x29c   : > { %s868_s26 = scalar_lea.vmem %s867_s27, 256  ;;  %p869_p3 = scmp.lt.s32.totalorder %s1220_s9, %s867_s27 }
 0x29d   : > { %p864_p11 = pnand %p863_p9, %p1115_p13  ;;  %p870_p4 = scmp.lt.s32.totalorder %s868_s26, %s862_s23 }
 0x29f   : > { %p865_p1 = pneg %p864_p11  ;;  %p871_p8 = por %p870_p4, %p869_p3 }
 0x2a1   : > { %p872_p12 = pnand %p871_p8, %p865_p1 }
 0x35d   : > { %v448_v19 = vpop.f32.mrb[0].mxu1 }
 0x35e   : > { %452 = vst.msk [vmem:[%s274_s8] sm:$0xff] %vm286_vm1, %v448_v19  ;;  %v657_v20 = vpop.f32.mrb[1].mxu1 }
 0x35f   : > { %875 = shalt.err (!%p872_p12)
}
 0x360   : > { %s876_s14 = scalar_lea.hbm %s1218_s29, 128  ;;  %s880_s18 = scalar_lea.hbm %s1270_s3, 1024 }
 0x361   : > { %p877_p0 = scmp.ne.s32.totalorder %s1218_s29, %s876_s14  ;;  %p881_p10 = scmp.lt.u32.totalorder %s1218_s29, %s1270_s3 }
 0x362   : > { %p882_p5 = scmp.lt.u32.totalorder %s880_s18, %s876_s14  ;;  %p884_p9 = scmp.lt.u32.totalorder %s876_s14, %s1218_s29 }
 0x363   : > { %p878_p2 = pnand %p877_p0, %p1115_p13 }
 0x364   : > { %p883_p7 = por %p882_p5, %p881_p10 }
 0x365   : > { %p879_p6 = pneg %p878_p2 }
 0x366   : > { %p885_p11 = por %p884_p9, %p883_p7 }
 0x368   : > { %p886_p1 = pnand %p885_p11, %p879_p6 }
 0x36a   : > { %889 = shalt.err (!%p886_p1)
}
 0x36b   : > { %664 = dma.vmem_to_hbm [thread:$0]  (%p1115_p13), %s1220_s9, 128, %s1218_s29, %s454_s5  }
 0x36c PF: > { %p687_p3 = scmp.ge.s32.totalorder %s952_s20, 2  ;;  %s499_s7 = sand.u32 1, %s932_s15  }
 0x36d   : > { %p1285_p4 = scmp.ne.s32.totalorder %s1277_s25, 0  ;;  %s500_s8 = scalar_lea.sflag [#allocation4], %s499_s7 }
 0x36f   : > { %p680_p8 = pnand %p687_p3, %p1285_p4 }
 0x371   : > { %923 = dma.done.wait (!%p680_p8), %s500_s8, 128  }
 0x372   : > { %925 = vsyncadd (!%p680_p8), %s500_s8, 4294967168  ;;  %s509_s12 = scalar_lea.sflag [#allocation10], %s499_s7 }
 0x373   : > { %927 = dma.done.wait (!%p680_p8), %s509_s12, 128  }
 0x374   : > { %929 = vsyncadd (!%p680_p8), %s509_s12, 4294967168  ;;  %s25_s20 = sadd.s32 1, %s952_s20   ;;  %s1286_s15 = smov %s936_s16 }
 0x375   : > { %p22_p12 = scmp.ge.s32.totalorder %s25_s20, 10   ;;  %s1287_s16 = smov %s940_s17 }
 0x376   : > { %s1288_s17 = smov %s1124_s28  ;;  %s1289_s18 = smov %s948_s19 }
 0x377   : > { %s1290_s19 = smov %s1292_s6  ;;  %24 = sbr.rel (!%p22_p12) target bundleno = 9 (0x9), region = 104 }
 0x37e   :  { %514 = vsyncpa [#allocation3], 1 }
 0x37f   :  { %516 = vsyncpa [#allocation3 + $0x1], 1 }
 0x380   :  { %517 = vsyncpa [#allocation6], 1 }
 0x381   :  { %518 = vsyncpa [#allocation4], 1 }
 0x382   :  { %520 = vsyncpa [#allocation4 + $0x1], 1 }
 0x383   :  { %521 = vsyncpa [#allocation10], 1 }
 0x384   :  { %523 = vsyncpa [#allocation10 + $0x1], 1 }

// kernel: tpu_custom_call.1
= control target key start
LH: loop header
LB: loop body
LE: loop exit
PB: predicated region body
PF: predicated region fallthrough
CT: control target
= control target key end

     0   :  { %s1336_s0 = inlined_call_operand.hbm [shape: f32[8,8,32], index: 0, kind: input, shape index: {}]   ;;  %s1337_s1 = inlined_call_operand.hbm [shape: f32[8,8,32], index: 1, kind: input, shape index: {}]   ;;  %s1338_s2 = inlined_call_operand.hbm [shape: f32[8,8,32], index: 2, kind: input, shape index: {}]   ;;  %s1339_s3 = inlined_call_operand.hbm [shape: f32[8,8,32], index: 3, kind: output, shape index: {0}]   ;;  %s1340_s4 = inlined_call_operand.hbm [shape: f32[8,8,8], index: 4, kind: output, shape index: {1}]  }
   0x1   :  { %1348 = sst [smem:[#allocation19_spill]] %s1337_s1 }
   0x2   :  { %10 = vsyncpa [#allocation3], 0 }
   0x3   :  { %12 = vsyncpa [#allocation3 + $0x1], 0 }
   0x4   :  { %13 = vsyncpa [#allocation6], 0 }
   0x5   :  { %15 = vsyncpa [#allocation6 + $0x1], 0 }
   0x6   :  { %16 = vsyncpa [#allocation4], 0 }
   0x7   :  { %18 = vsyncpa [#allocation4 + $0x1], 0 }
   0x8   :  { %19 = vsyncpa [#allocation10], 0 }
   0x9   :  { %21 = vsyncpa [#allocation10 + $0x1], 0  ;;  %s1039_s15 = smov 0   ;;  %s1041_s16 = smov 0  }
   0xa   :  { %s1043_s17 = smov 0   ;;  %s1045_s18 = smov 0  }
   0xb   :  { %s1047_s19 = smov 0   ;;  %s1049_s20 = smov 0  }
   0xc LB: > { %1349 = sst [smem:[#allocation15_spill]] %s1001_s19  ;;  %s1070_s21 = sadd.s32 4294967295, %s1005_s20   ;;  %s1005_s20 = sphi %s1049_s20, %s27_s20   ;;  %s1001_s19 = sphi %s1047_s19, %s1372_s19   ;;  %s997_s18 = sphi %s1045_s18, %s1371_s18   ;;  %s993_s17 = sphi %s1043_s17, %s1375_s17   ;;  %s989_s16 = sphi %s1041_s16, %s1374_s16   ;;  %s985_s15 = sphi %s1039_s15, %s1373_s15  }
   0xd   : > { %s676_s22 = sadd.s32 4294967294, %s1005_s20   ;;  %s39_s23 = sadd.s32 1, %s1001_s19 }
   0xe   : > { %s48_s24 = sadd.s32 1, %s993_s17  ;;  %p41_p0 = scmp.ge.s32.totalorder %s39_s23, 8 }
   0xf   : > { %p55_p1 = scmp.ne.s32.totalorder %s993_s17, %s989_s16  ;;  %p56_p2 = scmp.eq.s32.totalorder %s1005_s20, 0 }
  0x10   : > { %p61_p3 = scmp.ne.s32.totalorder %s989_s16, %s985_s15  ;;  %s1377_s23 = smov (%p41_p0, %s39_s23), 0 }
  0x11   : > { %1350 = sst [smem:[#allocation16_spill]] %s1377_s23  ;;  %p1082_p4 = por %p56_p2, %p55_p1 }
  0x12   : > { %p62_p5 = scmp.eq.s32.totalorder %s1070_s21, 0  ;;  %s43_s26 = ssub.s32 %s1001_s19, %s1377_s23 }
  0x13   : > { %p139_p6 = scmp.eq.s32.totalorder %s1070_s21, 7  ;;  %p46_p7 = scmp.eq.s32.totalorder %s43_s26, 0 }
  0x14   : > { %p1090_p8 = por %p62_p5, %p61_p3  ;;  %p145_p10 = scmp.eq.s32.totalorder %s676_s22, 7 }
  0x15   : > { %p1094_p9 = por %p139_p6, %p55_p1  ;;  %p741_p12 = scmp.lt.s32.totalorder %s1005_s20, 8 }
  0x16   : > { %s1352_s27 = scalar_select %p1090_p8, 1, 0 }
  0x17   : > { %s1353_s28 = scalar_select %p1094_p9, 1, 0 }
  0x18   : > { %s1099_s29 = scalar_select %p46_p7, %s993_s17, %s48_s24  }
  0x19   : > { %p1101_p11 = por %p145_p10, %p61_p3  ;;  %s1341_s5 = sand.u32 1, %s993_s17  }
  0x1a   : > { %1354 = sst [smem:[#allocation17_spill]] %s1099_s29  ;;  %s1109_s6 = sshll.u32 %s1341_s5, 3 }
  0x1b   : > { %s1355_s30 = scalar_select %p1101_p11, 1, 0 }
  0x1c   : > { %s1112_s7 = sshll.u32 %s1001_s19, 7  ;;  %p1116_p13 = pnand %p741_p12, %p1082_p4 }
  0x1d   : > { %1356 = sst [smem:[#allocation18_spill]] %s1355_s30  ;;  %s212_s9 = sand.u32 1, %s1005_s20  }
  0x1e   : > { %s1357_s8 = scalar_select %p1116_p13, 1, 0 }
  0x1f   : > { %s1358_s1 = sld [smem:[#allocation19_spill]]  ;;  %s216_s13 = scalar_lea.vmem [#allocation5], %s1109_s6 }
  0x20   : > { %s223_s14 = sshll.u32 %s216_s13, 4  ;;  %s1132_s22 = scalar_lea.sflag [#allocation6], %s212_s9  ;;  %s1129_s14 = int_to_ptr.vmem [resolvable:$true] %s223_s14 }
  0x21   : > { %p1138_p3 = pneg %p1116_p13 }
  0x25   : > { %s1125_s12 = scalar_lea.hbm %s1358_s1, %s1112_s7  ;;  %s802_s11 = scalar_lea.hbm %s1358_s1, 1024 }
  0x26   : > { %s797_s24 = scalar_lea.hbm %s1125_s12, 128  ;;  %p803_p6 = scmp.lt.u32.totalorder %s1125_s12, %s1358_s1 }
  0x27   : > { %p798_p2 = scmp.ne.s32.totalorder %s1125_s12, %s797_s24  ;;  %p804_p7 = scmp.lt.u32.totalorder %s802_s11, %s797_s24 }
  0x28   : > { %p806_p12 = scmp.lt.u32.totalorder %s797_s24, %s1125_s12 }
  0x29   : > { %p800_p4 = pnand %p1138_p3, %p798_p2  ;;  %p805_p10 = por %p804_p7, %p803_p6 }
  0x2b   : > { %p801_p5 = pneg %p800_p4  ;;  %p807_p0 = por %p806_p12, %p805_p10 }
  0x2d   : > { %p808_p1 = pnand %p807_p0, %p801_p5 }
  0x2f   : > { %811 = shalt.err (!%p808_p1)
}
  0x30   : > { %s812_s9 = scalar_lea.vmem %s1129_s14, 128  ;;  %s1007_s26 = smov [#allocation5]  }
  0x31   : > { %p813_p2 = scmp.ne.s32.totalorder %s1129_s14, %s812_s9  ;;  %s817_s10 = sshll.u32 %s1007_s26, 4  ;;  %s818_s10 = int_to_ptr.vmem [resolvable:$false] %s817_s10 }
  0x32   : > { %s819_s5 = scalar_lea.vmem %s818_s10, 256  ;;  %p820_p9 = scmp.lt.s32.totalorder %s1129_s14, %s818_s10 }
  0x33   : > { %p815_p4 = pnand %p813_p2, %p1138_p3  ;;  %p821_p8 = scmp.lt.s32.totalorder %s819_s5, %s812_s9 }
  0x35   : > { %p816_p11 = pneg %p815_p4  ;;  %p822_p6 = por %p821_p8, %p820_p9 }
  0x37   : > { %p823_p7 = pnand %p822_p6, %p816_p11 }
  0x39   : > { %826 = shalt.err (!%p823_p7)
}
  0x3a   : > { %730 = dma.hbm_to_vmem [thread:$0]  (!%p1116_p13), %s1125_s12, 128, %s1129_s14, %s1132_s22  }
  0x3b   : > { %p1360_p0 = scmp.lt.s32.totalorder %s1005_s20, 9  ;;  %p1361_p1 = scmp.ge.s32.totalorder %s1005_s20, 1 }
  0x3c   : > { %s1174_s9 = scalar_lea.hbm %s1336_s0, %s1112_s7  ;;  %s197_s26 = scalar_lea.vmem [#allocation2], %s1109_s6 }
  0x3d   : > { %p1166_p5 = pnand %p1361_p1, %p1360_p0  ;;  %s205_s10 = sshll.u32 %s197_s26, 4  ;;  %s1177_s10 = int_to_ptr.vmem [resolvable:$true] %s205_s10 }
  0x3e   : > { %s1183_s5 = scalar_lea.hbm %s1338_s2, %s1112_s7  ;;  %s1363_s1 = sand.u32 1, %s993_s17  }
  0x3f   : > { %s1362_s24 = scalar_select %p1166_p5, 1, 0 }
  0x40   : > { %s194_s23 = scalar_lea.sflag [#allocation3], %s1363_s1  ;;  %s827_s19 = scalar_lea.hbm %s1174_s9, 128 }
  0x41   : > { %p828_p8 = scmp.ne.s32.totalorder %s1174_s9, %s827_s19  ;;  %s832_s29 = scalar_lea.hbm %s1336_s0, 1024 }
  0x42   : > { %p833_p10 = scmp.lt.u32.totalorder %s1174_s9, %s1336_s0  ;;  %p834_p12 = scmp.lt.u32.totalorder %s832_s29, %s827_s19 }
  0x43   : > { %p830_p9 = pnand %p828_p8, %p1138_p3  ;;  %p836_p4 = scmp.lt.u32.totalorder %s827_s19, %s1174_s9 }
  0x44   : > { %p835_p2 = por %p834_p12, %p833_p10 }
  0x45   : > { %p831_p11 = pneg %p830_p9 }
  0x46   : > { %p837_p6 = por %p836_p4, %p835_p2 }
  0x48   : > { %p838_p7 = pnand %p837_p6, %p831_p11 }
  0x4a   : > { %841 = shalt.err (!%p838_p7)
}
  0x4b   : > { %s842_s1 = scalar_lea.vmem %s1177_s10, 128  ;;  %s1008_s7 = smov [#allocation2]  }
  0x4c   : > { %p843_p0 = scmp.ne.s32.totalorder %s1177_s10, %s842_s1  ;;  %s847_s12 = sshll.u32 %s1008_s7, 4  ;;  %s848_s12 = int_to_ptr.vmem [resolvable:$false] %s847_s12 }
  0x4d   : > { %s849_s30 = scalar_lea.vmem %s848_s12, 256  ;;  %p850_p9 = scmp.lt.s32.totalorder %s1177_s10, %s848_s12 }
  0x4e   : > { %p845_p1 = pnand %p843_p0, %p1138_p3  ;;  %p851_p5 = scmp.lt.s32.totalorder %s849_s30, %s842_s1 }
  0x50   : > { %p846_p8 = pneg %p845_p1  ;;  %p852_p10 = por %p851_p5, %p850_p9 }
  0x52   : > { %p853_p12 = pnand %p852_p10, %p846_p8 }
  0x54   : > { %856 = shalt.err (!%p853_p12)
}
  0x55   : > { %727 = dma.hbm_to_vmem [thread:$0]  (!%p1116_p13), %s1174_s9, 128, %s1177_s10, %s194_s23  }
  0x56   : > { %s234_s19 = scalar_lea.vmem [#allocation7], %s1109_s6  ;;  %s857_s14 = scalar_lea.hbm %s1183_s5, 128 }
  0x57   : > { %s241_s29 = sshll.u32 %s234_s19, 4  ;;  %p858_p11 = scmp.ne.s32.totalorder %s1183_s5, %s857_s14  ;;  %s242_s29 = int_to_ptr.vmem [resolvable:$true] %s241_s29 }
  0x58   : > { %s862_s26 = scalar_lea.hbm %s1338_s2, 1024  ;;  %p863_p4 = scmp.lt.u32.totalorder %s1183_s5, %s1338_s2 }
  0x59   : > { %p860_p5 = pnand %p858_p11, %p1138_p3  ;;  %p864_p6 = scmp.lt.u32.totalorder %s862_s26, %s857_s14 }
  0x5a   : > { %p866_p0 = scmp.lt.u32.totalorder %s857_s14, %s1183_s5 }
  0x5b   : > { %p861_p2 = pneg %p860_p5  ;;  %p865_p7 = por %p864_p6, %p863_p4 }
  0x5d   : > { %p867_p1 = por %p866_p0, %p865_p7 }
  0x5f   : > { %p868_p8 = pnand %p867_p1, %p861_p2 }
  0x61   : > { %871 = shalt.err (!%p868_p8)
}
  0x62   : > { %s872_s23 = scalar_lea.vmem %s242_s29, 128  ;;  %s1009_s6 = smov [#allocation7]  }
  0x63   : > { %p873_p9 = scmp.ne.s32.totalorder %s242_s29, %s872_s23  ;;  %s877_s9 = sshll.u32 %s1009_s6, 4  ;;  %s878_s9 = int_to_ptr.vmem [resolvable:$false] %s877_s9 }
  0x64   : > { %s879_s10 = scalar_lea.vmem %s878_s9, 256  ;;  %p880_p11 = scmp.lt.s32.totalorder %s242_s29, %s878_s9 }
  0x65   : > { %p875_p10 = pnand %p873_p9, %p1138_p3  ;;  %p881_p5 = scmp.lt.s32.totalorder %s879_s10, %s872_s23 }
  0x67   : > { %p876_p12 = pneg %p875_p10  ;;  %p882_p13 = por %p881_p5, %p880_p11 }
  0x69   : > { %p883_p4 = pnand %p882_p13, %p876_p12 }
  0x6b   : > { %886 = shalt.err (!%p883_p4)
}
  0x6c   : > { %p1364_p6 = scmp.ne.s32.totalorder %s1357_s8, 0  ;;  %p1365_p2 = scmp.ne.s32.totalorder %s1362_s24, 0 }
  0x6d   : > { %s1230_s25 = sand.u32 (!%p1365_p2), 1, %s989_s16   ;;  %p1366_p13 = scmp.ne.s32.totalorder (!%p1365_p2), %s1352_s27, 0 }
  0x6e   : > { %733 = dma.hbm_to_vmem [thread:$0]  (!%p1364_p6), %s1183_s5, 128, %s242_s29, %s1132_s22  }
  0x6f   : > { %250 = sbr.rel (%p1365_p2) target bundleno = 886 (0x376), region = 32  ;;  %s1233_s12 = sshll.u32 (!%p1365_p2), %s1230_s25, 3 }
  0x70   : > { %s253_s30 = scalar_lea.sflag (!%p1365_p2), [#allocation3], %s1230_s25  ;;  %s256_s19 = scalar_lea.vmem (!%p1365_p2), [#allocation2], %s1233_s12 }
  0x76   : > { %968 = dma.done.wait (%p1366_p13), %s253_s30, 128  }
  0x77   : > { %970 = vsyncadd (%p1366_p13), %s253_s30, 4294967168  ;;  %s261_s8 = sand.u32 1, %s1070_s21   ;;  %s265_s24 = scalar_lea.vmem [#allocation5], %s1233_s12 }
  0x78   : > { %s262_s22 = scalar_lea.sflag [#allocation6], %s261_s8 }
  0x79   : > { %972 = dma.done.wait (%p1366_p13), %s262_s22, 256  }
  0x7a   : > { %974 = vsyncadd (%p1366_p13), %s262_s22, 4294967040  ;;  %v1010_v0 = vmov 0.0   ;;  %vm1011_vm0 = vmmov 0   ;;  %vm318_vm1 = vcmask 261120   ;;  %v315_v1 = vld [vmem:[%s265_s24] sm:$0xff]  ;;  %v314_v2 = vld [vmem:[%s256_s19] sm:$0xff] }
  0x7b   : > { %704 = vmatprep.subr.mxu0 %v1010_v0  ;;  %706 = vmatprep.mubr.msk.f32.mxu0 %vm1011_vm0, %v1010_v0  ;;  %v317_v3 = vmul.f32 0.17677669, %v314_v2  ;;  %vm395_vm2 = vcmask 64512   ;;  %s274_s21 = scalar_lea.vmem [#allocation7], %s1233_s12  ;;  %s313_s27 = scalar_lea.vmem [#allocation9], %s1233_s12 }
  0x7c   : > { %709 = vmatprep.subr.mxu1 %v1010_v0  ;;  %711 = vmatprep.mubr.msk.f32.mxu1 %vm1011_vm0, %v1010_v0  ;;  %v316_v12 = vld [vmem:[%s274_s21] sm:$0xff]  ;;  %s696_s5 = sshll.u32 %s997_s18, 7  ;;  %s519_s13 = sshll.u32 %s313_s27, 4  ;;  %s520_s13 = int_to_ptr.vmem [resolvable:$true] %s519_s13 }
  0x7d   : > { %705 = vmatpush3.xpose.msk.msra.mxu0 %vm318_vm1, %v315_v1  ;;  %710 = vmatpush3.msra.mxu1 %v316_v12  ;;  %s1261_s11 = scalar_lea.hbm %s1340_s4, %s696_s5  ;;  %s491_s26 = scalar_lea.sflag [#allocation10], %s1230_s25 }
  0x7e   : > { %s887_s1 = scalar_lea.vmem %s520_s13, 128  ;;  %p1367_p7 = scmp.ne.s32.totalorder %s1353_s28, 0 }
  0x7f   : > { %p888_p3 = scmp.ne.s32.totalorder %s520_s13, %s887_s1  ;;  %s1012_s7 = smov [#allocation9]  }
  0x80   : > { %707 = vmatmul.mubr.msk.f32.vlgmr.msra.gmra.mrb[0].mxu0 %vm318_vm1, %v317_v3  ;;  %s891_s23 = sshll.u32 %s1012_s7, 4  ;;  %s892_s23 = int_to_ptr.vmem [resolvable:$false] %s891_s23 }
  0x81   : > { %p889_p0 = pnand %p888_p3, %p1367_p7  ;;  %s893_s6 = scalar_lea.vmem %s892_s23, 256 }
  0x82   : > { %p894_p8 = scmp.lt.s32.totalorder %s520_s13, %s892_s23  ;;  %p895_p9 = scmp.lt.s32.totalorder %s893_s6, %s887_s1 }
  0x83   : > { %p890_p1 = pneg %p889_p0 }
  0x84   : > { %p896_p10 = por %p895_p9, %p894_p8 }
  0x86   : > { %p897_p12 = pnand %p896_p10, %p890_p1 }
 0x153   : > { %v391_v4 = vpop.f32.mrb[0].mxu0 }
 0x154   : > { %v708_v5 = vpop.f32.mrb[1].mxu0  ;;  %v396_v6 = vsel %vm395_vm2, %v391_v4, -inf }
 0x155   : > { %397 = vmax.xlane.f32.xlu0 %v396_v6 }
 0x1e2   : > { %v398_v7 = vpop.xlane.xlu0 %397 }
 0x1e3   : > { %v399_v8 = vsub.f32 %v391_v4, %v398_v7 }
 0x1e5   : > { %v400_v9 = vmul.f32 1.442695, %v399_v8 }
 0x1e7   : > { %793 = vpow2.f32 %v400_v9 }
 0x1f1   : > { %v794_v10 = vpop.eup %793 }
 0x1f2   : > { %v402_v11 = vsel %vm395_vm2, %v794_v10, 0.0 }
 0x1f3   : > { %403 = vadd.xlane.f32.xlu0 %v402_v11 }
 0x280   : > { %v404_v13 = vpop.xlane.xlu0 %403 }
 0x281   : > { %795 = vrcp.f32 %v404_v13 }
 0x28b   : > { %v796_v14 = vpop.eup %795 }
 0x28c   : > { %v406_v15 = vmul.f32 %v796_v14, %v404_v13 }
 0x28e   : > { %v407_v16 = vsub.f32 2.0, %v406_v15 }
 0x290   : > { %v408_v17 = vmul.f32 %v796_v14, %v407_v16 }
 0x292   : > { %v409_v18 = vmul.f32 %v794_v10, %v408_v17 }
 0x294   : > { %712 = vmatmul.mubr.msk.f32.vlgmr.msra.gmra.mrb[0].mxu1 %vm395_vm2, %v409_v18  ;;  %410 = vst.msk [vmem:[%s313_s27] sm:$0xff] %vm395_vm2, %v409_v18 }
 0x295   : > { %900 = shalt.err (!%p897_p12)
}
 0x296   : > { %s901_s9 = scalar_lea.hbm %s1261_s11, 128  ;;  %s905_s19 = scalar_lea.hbm %s1340_s4, 1024 }
 0x297   : > { %p902_p11 = scmp.ne.s32.totalorder %s1261_s11, %s901_s9  ;;  %p906_p6 = scmp.lt.u32.totalorder %s1261_s11, %s1340_s4 }
 0x298   : > { %p907_p2 = scmp.lt.u32.totalorder %s905_s19, %s901_s9  ;;  %p909_p3 = scmp.lt.u32.totalorder %s901_s9, %s1261_s11 }
 0x299   : > { %p903_p5 = pnand %p902_p11, %p1367_p7 }
 0x29a   : > { %p908_p13 = por %p907_p2, %p906_p6 }
 0x29b   : > { %p904_p4 = pneg %p903_p5 }
 0x29c   : > { %p910_p0 = por %p909_p3, %p908_p13 }
 0x29e   : > { %p911_p1 = pnand %p910_p0, %p904_p4 }
 0x2a0   : > { %914 = shalt.err (!%p911_p1)
}
 0x2a1   : > { %721 = dma.vmem_to_hbm [thread:$0]  (%p1367_p7), %s520_s13, 128, %s1261_s11, %s491_s26  }
 0x2a2   : > { %s306_s24 = scalar_lea.vmem [#allocation8], %s1233_s12  ;;  %s1287_s14 = scalar_lea.hbm %s1339_s3, %s696_s5 }
 0x2a3   : > { %s505_s21 = sshll.u32 %s306_s24, 4  ;;  %s486_s1 = scalar_lea.sflag [#allocation4], %s1230_s25  ;;  %s1289_s21 = int_to_ptr.vmem [resolvable:$true] %s505_s21 }
 0x2a4   : > { %s915_s7 = scalar_lea.vmem %s1289_s21, 128  ;;  %s1013_s18 = smov [#allocation8]  }
 0x2a5   : > { %p916_p8 = scmp.ne.s32.totalorder %s1289_s21, %s915_s7  ;;  %s919_s12 = sshll.u32 %s1013_s18, 4  ;;  %s920_s12 = int_to_ptr.vmem [resolvable:$false] %s919_s12 }
 0x2a6   : > { %s921_s5 = scalar_lea.vmem %s920_s12, 256  ;;  %p922_p12 = scmp.lt.s32.totalorder %s1289_s21, %s920_s12 }
 0x2a7   : > { %p917_p9 = pnand %p916_p8, %p1367_p7  ;;  %p923_p11 = scmp.lt.s32.totalorder %s921_s5, %s915_s7 }
 0x2a9   : > { %p918_p10 = pneg %p917_p9  ;;  %p924_p5 = por %p923_p11, %p922_p12 }
 0x2ab   : > { %p925_p4 = pnand %p924_p5, %p918_p10 }
 0x367   : > { %v480_v19 = vpop.f32.mrb[0].mxu1 }
 0x368   : > { %484 = vst.msk [vmem:[%s306_s24] sm:$0xff] %vm318_vm1, %v480_v19  ;;  %v713_v20 = vpop.f32.mrb[1].mxu1 }
 0x369   : > { %928 = shalt.err (!%p925_p4)
}
 0x36a   : > { %s929_s25 = scalar_lea.hbm %s1287_s14, 128  ;;  %s933_s26 = scalar_lea.hbm %s1339_s3, 1024 }
 0x36b   : > { %p930_p6 = scmp.ne.s32.totalorder %s1287_s14, %s929_s25  ;;  %p934_p3 = scmp.lt.u32.totalorder %s1287_s14, %s1339_s3 }
 0x36c   : > { %p935_p0 = scmp.lt.u32.totalorder %s933_s26, %s929_s25  ;;  %p937_p8 = scmp.lt.u32.totalorder %s929_s25, %s1287_s14 }
 0x36d   : > { %p931_p2 = pnand %p930_p6, %p1367_p7 }
 0x36e   : > { %p936_p1 = por %p935_p0, %p934_p3 }
 0x36f   : > { %p932_p13 = pneg %p931_p2 }
 0x370   : > { %p938_p9 = por %p937_p8, %p936_p1 }
 0x372   : > { %p939_p10 = pnand %p938_p9, %p932_p13 }
 0x374   : > { %942 = shalt.err (!%p939_p10)
}
 0x375   : > { %720 = dma.vmem_to_hbm [thread:$0]  (%p1367_p7), %s1289_s21, 128, %s1287_s14, %s486_s1  }
 0x376 PF: > { %s1368_s9 = sld [smem:[#allocation18_spill]]  ;;  %p742_p12 = scmp.ge.s32.totalorder %s1005_s20, 2 }
 0x377   : > { %s531_s10 = sand.u32 1, %s985_s15  }
 0x378   : > { %s532_s30 = scalar_lea.sflag [#allocation4], %s531_s10 }
 0x37c   : > { %p1369_p11 = scmp.ne.s32.totalorder %s1368_s9, 0 }
 0x37e   : > { %p735_p5 = pnand %p742_p12, %p1369_p11 }
 0x380   : > { %976 = dma.done.wait (!%p735_p5), %s532_s30, 128  }
 0x381   : > { %978 = vsyncadd (!%p735_p5), %s532_s30, 4294967168  ;;  %s541_s19 = scalar_lea.sflag [#allocation10], %s531_s10 }
 0x382   : > { %980 = dma.done.wait (!%p735_p5), %s541_s19, 128  }
 0x383   : > { %982 = vsyncadd (!%p735_p5), %s541_s19, 4294967168  ;;  %s27_s20 = sadd.s32 1, %s1005_s20   ;;  %s1370_s28 = sld [smem:[#allocation17_spill]] }
 0x384   : > { %p24_p4 = scmp.ge.s32.totalorder %s27_s20, 10   ;;  %s1371_s18 = sld [smem:[#allocation15_spill]] }
 0x385   : > { %s1372_s19 = sld [smem:[#allocation16_spill]]  ;;  %s1373_s15 = smov %s989_s16 }
 0x386   : > { %s1374_s16 = smov %s993_s17  ;;  %26 = sbr.rel (!%p24_p4) target bundleno = 12 (0xc), region = 118 }
 0x389   : > { %s1375_s17 = smov %s1370_s28 }
 0x38d   :  { %546 = vsyncpa [#allocation3], 1 }
 0x38e   :  { %548 = vsyncpa [#allocation3 + $0x1], 1 }
 0x38f   :  { %549 = vsyncpa [#allocation6], 1 }
 0x390   :  { %551 = vsyncpa [#allocation6 + $0x1], 1 }
 0x391   :  { %552 = vsyncpa [#allocation4], 1 }
 0x392   :  { %554 = vsyncpa [#allocation4 + $0x1], 1 }
 0x393   :  { %555 = vsyncpa [#allocation10], 1 }
 0x394   :  { %557 = vsyncpa [#allocation10 + $0x1], 1 }

</bundles_post_ra>
